<compile_context>
chip_gen: v6e
topology: v6e:2x2x1
jax: 0.10.0
libtpu: 0.0.40
codegen_flags: <defaults>
</compile_context>

<pallas_src>
import functools

import jax
import jax.numpy as jnp
from jax import lax
from jax.experimental import pallas as pl
from jax.experimental.pallas import tpu as pltpu

INPUT_DIM = 28
HIDDEN = 100
OUTPUT_DIM = 10

DP = 128   # padded input-feature dim (lane quantum)
HP = 128   # padded hidden dim (lane quantum)
OP = 128   # padded fc-output dim (lane-dense stores)


def rnn_kernel(x_ref, w_ih_t_ref, b_ref, w_hh_t_ref, w_fc_t_ref, b_fc_ref,
               out_ref, xp_ref):
    """Whole forward in one invocation; everything VMEM resident.

    x_ref:      (S*Bp, Dp) time-major input; rows [t*Bp:(t+1)*Bp] are timestep t
    w_ih_t_ref: (Dp, Hp)   W_ih transposed, zero-padded
    b_ref:      (1, Hp)    b_ih + b_hh, zero-padded
    w_hh_t_ref: (Hp, Hp)   W_hh transposed, zero-padded
    w_fc_t_ref: (Hp, Op)   fc weight transposed, zero-padded
    b_fc_ref:   (1, Op)    fc bias, zero-padded
    out_ref:    (Bp, Op)
    xp_ref:     (S*Bp, Hp) VMEM scratch holding the hoisted input projection
    """
    SB = x_ref.shape[0]
    Bp = out_ref.shape[0]
    Hp = w_hh_t_ref.shape[0]
    S = SB // Bp

    # Hoisted input projection: ONE MXU matmul for all timesteps at once.
    xp_ref[...] = (jnp.dot(x_ref[...], w_ih_t_ref[...],
                           preferred_element_type=jnp.float32)
                   + b_ref[...])

    w_hh_t = w_hh_t_ref[...]          # keep recurrent weight in vregs (16 vregs)

    def step(t, h):
        # Hidden state stays a loop-carried value (1 vreg) — no VMEM round-trip.
        off = pl.multiple_of(t * Bp, Bp)
        pre = xp_ref[pl.ds(off, Bp), :] + jnp.dot(
            h, w_hh_t, preferred_element_type=jnp.float32)
        return jnp.maximum(pre, 0.0)  # relu nonlinearity

    h = lax.fori_loop(0, S, step, jnp.zeros((Bp, Hp), jnp.float32),
                      unroll=True)

    out_ref[...] = (jnp.dot(h, w_fc_t_ref[...],
                            preferred_element_type=jnp.float32)
                    + b_fc_ref[...])


def prepare_params(w_ih, w_hh, b_ih, b_hh, w_fc, b_fc):
    """One-time (per-model) weight padding/transposition, kept OFF the per-call path."""
    f32 = jnp.float32
    H, D = w_ih.shape
    O = w_fc.shape[0]
    w_ih_t = jnp.zeros((DP, HP), f32).at[:D, :H].set(w_ih.T.astype(f32))
    b = jnp.zeros((1, HP), f32).at[0, :H].set((b_ih + b_hh).astype(f32))
    w_hh_t = jnp.zeros((HP, HP), f32).at[:H, :H].set(w_hh.T.astype(f32))
    w_fc_t = jnp.zeros((HP, OP), f32).at[:H, :O].set(w_fc.T.astype(f32))
    b_fc_p = jnp.zeros((1, OP), f32).at[0, :O].set(b_fc.astype(f32))
    return (w_ih_t, b, w_hh_t, w_fc_t, b_fc_p)


@jax.jit
def rnn_model_forward(x, w_ih_t, b, w_hh_t, w_fc_t, b_fc_p):
    """x: (batch, seq, input_dim), batch_first like the PyTorch module."""
    B, S, D = x.shape
    Bp = max(8, ((B + 7) // 8) * 8)   # pad batch to the 8-sublane quantum

    # Only cheap per-call prep on the *small* 28-wide x: time-major transpose,
    # one pad covering batch (-> Bp) and feature (-> Dp), flatten to 2D.
    x_tm = jnp.transpose(x.astype(jnp.float32), (1, 0, 2))          # (S, B, D)
    x_tm = jnp.pad(x_tm, ((0, 0), (0, Bp - B), (0, DP - D)))        # (S, Bp, Dp)
    x2d = x_tm.reshape(S * Bp, DP)

    vmem = pl.BlockSpec(memory_space=pltpu.MemorySpace.VMEM)
    out_p = pl.pallas_call(
        rnn_kernel,
        out_shape=jax.ShapeDtypeStruct((Bp, OP), jnp.float32),
        in_specs=[vmem] * 6,
        out_specs=vmem,
        scratch_shapes=[pltpu.VMEM((S * Bp, HP), jnp.float32)],   # xp scratch
    )(x2d, w_ih_t, b, w_hh_t, w_fc_t, b_fc_p)

    # Padded batch rows / output lanes are garbage/zero by construction; slice.
    return out_p[:B, :OUTPUT_DIM]


def reference_forward(x, w_ih, w_hh, b_ih, b_hh, w_fc, b_fc):
    """Pure-JAX reference matching torch.nn.RNN(relu, batch_first) + Linear."""
    B, S, D = x.shape
    h = jnp.zeros((B, HIDDEN), jnp.float32)
    for t in range(S):
        h = jax.nn.relu(x[:, t, :] @ w_ih.T + b_ih + h @ w_hh.T + b_hh)
    return h @ w_fc.T + b_fc


if __name__ == "__main__":
    key = jax.random.PRNGKey(0)
    kx, k1, k2, k3, k4, k5, k6 = jax.random.split(key, 7)

    B, S = 2, 8
    bound = 1.0 / jnp.sqrt(float(HIDDEN))  # PyTorch default init bound

    x = jax.random.normal(kx, (B, S, INPUT_DIM), jnp.float32)
    w_ih = jax.random.uniform(k1, (HIDDEN, INPUT_DIM), jnp.float32, -bound, bound)
    w_hh = jax.random.uniform(k2, (HIDDEN, HIDDEN), jnp.float32, -bound, bound)
    b_ih = jax.random.uniform(k3, (HIDDEN,), jnp.float32, -bound, bound)
    b_hh = jax.random.uniform(k4, (HIDDEN,), jnp.float32, -bound, bound)
    w_fc = jax.random.uniform(k5, (OUTPUT_DIM, HIDDEN), jnp.float32, -bound, bound)
    b_fc = jax.random.uniform(k6, (OUTPUT_DIM,), jnp.float32, -bound, bound)

    # One-time parameter prep (off the per-call latency path).
    params = prepare_params(w_ih, w_hh, b_ih, b_hh, w_fc, b_fc)
    params = jax.block_until_ready(params)

    out = rnn_model_forward(x, *params)
    out = jax.block_until_ready(out)

    ref = reference_forward(x, w_ih, w_hh, b_ih, b_hh, w_fc, b_fc)
    assert out.shape == (B, OUTPUT_DIM)
    assert jnp.allclose(out, ref, atol=1e-4, rtol=1e-4), "mismatch vs reference"

    print("KERNEL_OK")
</pallas_src>

<mosaic_0001>
module attributes {stable_mosaic.version = 11 : i64} {
  func.func @rnn_kernel(%arg0: memref<64x128xf32, #tpu.memory_space<vmem>>, %arg1: memref<128x128xf32, #tpu.memory_space<vmem>>, %arg2: memref<1x128xf32, #tpu.memory_space<vmem>>, %arg3: memref<128x128xf32, #tpu.memory_space<vmem>>, %arg4: memref<128x128xf32, #tpu.memory_space<vmem>>, %arg5: memref<1x128xf32, #tpu.memory_space<vmem>>, %arg6: memref<8x128xf32, #tpu.memory_space<vmem>>, %arg7: memref<64x128xf32, #tpu.memory_space<vmem>>) attributes {dimension_semantics = [], scalar_prefetch = 0 : i64, scratch_operands = 1 : i64, tpu.core_type = #tpu.core_type<tc>} {
    %c0 = arith.constant 0 : index
    %c0_0 = arith.constant 0 : index
    %0 = vector.load %arg0[%c0, %c0_0] : memref<64x128xf32, #tpu.memory_space<vmem>>, vector<64x128xf32>
    %c0_1 = arith.constant 0 : index
    %c0_2 = arith.constant 0 : index
    %1 = vector.load %arg1[%c0_1, %c0_2] : memref<128x128xf32, #tpu.memory_space<vmem>>, vector<128x128xf32>
    %cst = arith.constant dense<0.000000e+00> : vector<64x128xf32>
    %2 = tpu.matmul %0, %1, %cst {dimension_numbers = #tpu.dot_dimension_numbers<[1], [0], [0], [1], [0, 0, 1, 1], [], []>} : vector<64x128xf32>, vector<128x128xf32>, vector<64x128xf32> -> vector<64x128xf32>
    %c0_3 = arith.constant 0 : index
    %c0_4 = arith.constant 0 : index
    %3 = vector.load %arg2[%c0_3, %c0_4] : memref<1x128xf32, #tpu.memory_space<vmem>>, vector<1x128xf32>
    %4 = vector.broadcast %3 : vector<1x128xf32> to vector<64x128xf32>
    %5 = arith.addf %2, %4 : vector<64x128xf32>
    %c0_5 = arith.constant 0 : index
    %c0_6 = arith.constant 0 : index
    %6 = vector.load %arg7[%c0_5, %c0_6] : memref<64x128xf32, #tpu.memory_space<vmem>>, vector<64x128xf32>
    tpu.vector_store %arg7[%c0_5, %c0_6], %5 {strides = array<i32>} : memref<64x128xf32, #tpu.memory_space<vmem>>, vector<64x128xf32>,
    %c0_7 = arith.constant 0 : index
    %c0_8 = arith.constant 0 : index
    %7 = vector.load %arg3[%c0_7, %c0_8] : memref<128x128xf32, #tpu.memory_space<vmem>>, vector<128x128xf32>
    %cst_9 = arith.constant 0.000000e+00 : f32
    %8 = vector.broadcast %cst_9 : f32 to vector<8x128xf32>
    %c0_i32 = arith.constant 0 : i32
    %c8_i32 = arith.constant 8 : i32
    %9 = arith.muli %c0_i32, %c8_i32 : i32
    %10 = tpu.assume_multiple %9, 8 : i32
    %11 = arith.index_cast %10 : i32 to index
    %c0_10 = arith.constant 0 : index
    %12 = vector.load %arg7[%11, %c0_10] : memref<64x128xf32, #tpu.memory_space<vmem>>, vector<8x128xf32>
    %cst_11 = arith.constant dense<0.000000e+00> : vector<8x128xf32>
    %13 = tpu.matmul %8, %7, %cst_11 {dimension_numbers = #tpu.dot_dimension_numbers<[1], [0], [0], [1], [0, 0, 1, 1], [], []>} : vector<8x128xf32>, vector<128x128xf32>, vector<8x128xf32> -> vector<8x128xf32>
    %14 = arith.addf %12, %13 : vector<8x128xf32>
    %cst_12 = arith.constant 0.000000e+00 : f32
    %15 = vector.broadcast %cst_12 : f32 to vector<8x128xf32>
    %16 = arith.maximumf %14, %15 : vector<8x128xf32>
    %c1_i32 = arith.constant 1 : i32
    %c8_i32_13 = arith.constant 8 : i32
    %17 = arith.muli %c1_i32, %c8_i32_13 : i32
    %18 = tpu.assume_multiple %17, 8 : i32
    %19 = arith.index_cast %18 : i32 to index
    %c0_14 = arith.constant 0 : index
    %20 = vector.load %arg7[%19, %c0_14] : memref<64x128xf32, #tpu.memory_space<vmem>>, vector<8x128xf32>
    %cst_15 = arith.constant dense<0.000000e+00> : vector<8x128xf32>
    %21 = tpu.matmul %16, %7, %cst_15 {dimension_numbers = #tpu.dot_dimension_numbers<[1], [0], [0], [1], [0, 0, 1, 1], [], []>} : vector<8x128xf32>, vector<128x128xf32>, vector<8x128xf32> -> vector<8x128xf32>
    %22 = arith.addf %20, %21 : vector<8x128xf32>
    %cst_16 = arith.constant 0.000000e+00 : f32
    %23 = vector.broadcast %cst_16 : f32 to vector<8x128xf32>
    %24 = arith.maximumf %22, %23 : vector<8x128xf32>
    %c2_i32 = arith.constant 2 : i32
    %c8_i32_17 = arith.constant 8 : i32
    %25 = arith.muli %c2_i32, %c8_i32_17 : i32
    %26 = tpu.assume_multiple %25, 8 : i32
    %27 = arith.index_cast %26 : i32 to index
    %c0_18 = arith.constant 0 : index
    %28 = vector.load %arg7[%27, %c0_18] : memref<64x128xf32, #tpu.memory_space<vmem>>, vector<8x128xf32>
    %cst_19 = arith.constant dense<0.000000e+00> : vector<8x128xf32>
    %29 = tpu.matmul %24, %7, %cst_19 {dimension_numbers = #tpu.dot_dimension_numbers<[1], [0], [0], [1], [0, 0, 1, 1], [], []>} : vector<8x128xf32>, vector<128x128xf32>, vector<8x128xf32> -> vector<8x128xf32>
    %30 = arith.addf %28, %29 : vector<8x128xf32>
    %cst_20 = arith.constant 0.000000e+00 : f32
    %31 = vector.broadcast %cst_20 : f32 to vector<8x128xf32>
    %32 = arith.maximumf %30, %31 : vector<8x128xf32>
    %c3_i32 = arith.constant 3 : i32
    %c8_i32_21 = arith.constant 8 : i32
    %33 = arith.muli %c3_i32, %c8_i32_21 : i32
    %34 = tpu.assume_multiple %33, 8 : i32
    %35 = arith.index_cast %34 : i32 to index
    %c0_22 = arith.constant 0 : index
    %36 = vector.load %arg7[%35, %c0_22] : memref<64x128xf32, #tpu.memory_space<vmem>>, vector<8x128xf32>
    %cst_23 = arith.constant dense<0.000000e+00> : vector<8x128xf32>
    %37 = tpu.matmul %32, %7, %cst_23 {dimension_numbers = #tpu.dot_dimension_numbers<[1], [0], [0], [1], [0, 0, 1, 1], [], []>} : vector<8x128xf32>, vector<128x128xf32>, vector<8x128xf32> -> vector<8x128xf32>
    %38 = arith.addf %36, %37 : vector<8x128xf32>
    %cst_24 = arith.constant 0.000000e+00 : f32
    %39 = vector.broadcast %cst_24 : f32 to vector<8x128xf32>
    %40 = arith.maximumf %38, %39 : vector<8x128xf32>
    %c4_i32 = arith.constant 4 : i32
    %c8_i32_25 = arith.constant 8 : i32
    %41 = arith.muli %c4_i32, %c8_i32_25 : i32
    %42 = tpu.assume_multiple %41, 8 : i32
    %43 = arith.index_cast %42 : i32 to index
    %c0_26 = arith.constant 0 : index
    %44 = vector.load %arg7[%43, %c0_26] : memref<64x128xf32, #tpu.memory_space<vmem>>, vector<8x128xf32>
    %cst_27 = arith.constant dense<0.000000e+00> : vector<8x128xf32>
    %45 = tpu.matmul %40, %7, %cst_27 {dimension_numbers = #tpu.dot_dimension_numbers<[1], [0], [0], [1], [0, 0, 1, 1], [], []>} : vector<8x128xf32>, vector<128x128xf32>, vector<8x128xf32> -> vector<8x128xf32>
    %46 = arith.addf %44, %45 : vector<8x128xf32>
    %cst_28 = arith.constant 0.000000e+00 : f32
    %47 = vector.broadcast %cst_28 : f32 to vector<8x128xf32>
    %48 = arith.maximumf %46, %47 : vector<8x128xf32>
    %c5_i32 = arith.constant 5 : i32
    %c8_i32_29 = arith.constant 8 : i32
    %49 = arith.muli %c5_i32, %c8_i32_29 : i32
    %50 = tpu.assume_multiple %49, 8 : i32
    %51 = arith.index_cast %50 : i32 to index
    %c0_30 = arith.constant 0 : index
    %52 = vector.load %arg7[%51, %c0_30] : memref<64x128xf32, #tpu.memory_space<vmem>>, vector<8x128xf32>
    %cst_31 = arith.constant dense<0.000000e+00> : vector<8x128xf32>
    %53 = tpu.matmul %48, %7, %cst_31 {dimension_numbers = #tpu.dot_dimension_numbers<[1], [0], [0], [1], [0, 0, 1, 1], [], []>} : vector<8x128xf32>, vector<128x128xf32>, vector<8x128xf32> -> vector<8x128xf32>
    %54 = arith.addf %52, %53 : vector<8x128xf32>
    %cst_32 = arith.constant 0.000000e+00 : f32
    %55 = vector.broadcast %cst_32 : f32 to vector<8x128xf32>
    %56 = arith.maximumf %54, %55 : vector<8x128xf32>
    %c6_i32 = arith.constant 6 : i32
    %c8_i32_33 = arith.constant 8 : i32
    %57 = arith.muli %c6_i32, %c8_i32_33 : i32
    %58 = tpu.assume_multiple %57, 8 : i32
    %59 = arith.index_cast %58 : i32 to index
    %c0_34 = arith.constant 0 : index
    %60 = vector.load %arg7[%59, %c0_34] : memref<64x128xf32, #tpu.memory_space<vmem>>, vector<8x128xf32>
    %cst_35 = arith.constant dense<0.000000e+00> : vector<8x128xf32>
    %61 = tpu.matmul %56, %7, %cst_35 {dimension_numbers = #tpu.dot_dimension_numbers<[1], [0], [0], [1], [0, 0, 1, 1], [], []>} : vector<8x128xf32>, vector<128x128xf32>, vector<8x128xf32> -> vector<8x128xf32>
    %62 = arith.addf %60, %61 : vector<8x128xf32>
    %cst_36 = arith.constant 0.000000e+00 : f32
    %63 = vector.broadcast %cst_36 : f32 to vector<8x128xf32>
    %64 = arith.maximumf %62, %63 : vector<8x128xf32>
    %c7_i32 = arith.constant 7 : i32
    %c8_i32_37 = arith.constant 8 : i32
    %65 = arith.muli %c7_i32, %c8_i32_37 : i32
    %66 = tpu.assume_multiple %65, 8 : i32
    %67 = arith.index_cast %66 : i32 to index
    %c0_38 = arith.constant 0 : index
    %68 = vector.load %arg7[%67, %c0_38] : memref<64x128xf32, #tpu.memory_space<vmem>>, vector<8x128xf32>
    %cst_39 = arith.constant dense<0.000000e+00> : vector<8x128xf32>
    %69 = tpu.matmul %64, %7, %cst_39 {dimension_numbers = #tpu.dot_dimension_numbers<[1], [0], [0], [1], [0, 0, 1, 1], [], []>} : vector<8x128xf32>, vector<128x128xf32>, vector<8x128xf32> -> vector<8x128xf32>
    %70 = arith.addf %68, %69 : vector<8x128xf32>
    %cst_40 = arith.constant 0.000000e+00 : f32
    %71 = vector.broadcast %cst_40 : f32 to vector<8x128xf32>
    %72 = arith.maximumf %70, %71 : vector<8x128xf32>
    %c8_i32_41 = arith.constant 8 : i32
    %c0_42 = arith.constant 0 : index
    %c0_43 = arith.constant 0 : index
    %73 = vector.load %arg4[%c0_42, %c0_43] : memref<128x128xf32, #tpu.memory_space<vmem>>, vector<128x128xf32>
    %cst_44 = arith.constant dense<0.000000e+00> : vector<8x128xf32>
    %74 = tpu.matmul %72, %73, %cst_44 {dimension_numbers = #tpu.dot_dimension_numbers<[1], [0], [0], [1], [0, 0, 1, 1], [], []>} : vector<8x128xf32>, vector<128x128xf32>, vector<8x128xf32> -> vector<8x128xf32>
    %c0_45 = arith.constant 0 : index
    %c0_46 = arith.constant 0 : index
    %75 = vector.load %arg5[%c0_45, %c0_46] : memref<1x128xf32, #tpu.memory_space<vmem>>, vector<1x128xf32>
    %76 = vector.broadcast %75 : vector<1x128xf32> to vector<8x128xf32>
    %77 = arith.addf %74, %76 : vector<8x128xf32>
    %c0_47 = arith.constant 0 : index
    %c0_48 = arith.constant 0 : index
    %78 = vector.load %arg6[%c0_47, %c0_48] : memref<8x128xf32, #tpu.memory_space<vmem>>, vector<8x128xf32>
    tpu.vector_store %arg6[%c0_47, %c0_48], %77 {strides = array<i32>} : memref<8x128xf32, #tpu.memory_space<vmem>>, vector<8x128xf32>,
    return
  }
}

</mosaic_0001>

<bundles_post_ra>
// kernel: rnn_model_forward.1
= control target key start
LH: loop header
LB: loop body
LE: loop exit
PB: predicated region body
PF: predicated region fallthrough
CT: control target
= control target key end

     0   :  { %11 = vsyncpa [#allocation4], 0  ;;  %s1956_s0 = inlined_call_operand.vmem [shape: f32[64,128], index: 0, kind: input, shape index: {}]   ;;  %s1957_s1 = inlined_call_operand.hbm [shape: f32[128,128], index: 1, kind: input, shape index: {}]   ;;  %s1958_s2 = inlined_call_operand.vmem [shape: f32[1,128], index: 2, kind: input, shape index: {}]   ;;  %s1959_s3 = inlined_call_operand.hbm [shape: f32[128,128], index: 3, kind: input, shape index: {}]   ;;  %s1960_s4 = inlined_call_operand.hbm [shape: f32[128,128], index: 4, kind: input, shape index: {}]   ;;  %s1961_s5 = inlined_call_operand.vmem [shape: f32[1,128], index: 5, kind: input, shape index: {}]   ;;  %s1962_s6 = inlined_call_operand.vmem [shape: f32[8,128], index: 6, kind: output, shape index: {}]  }
   0x1   :  { %12 = vsyncpa [#allocation6], 0  ;;  %s1524_s21 = smov [#allocation5]   ;;  %s1525_s23 = smov [#allocation3]  }
   0x2   :  { %s34_s22 = sshll.u32 %s1524_s21, 4  ;;  %s20_s24 = sshll.u32 %s1525_s23, 4  ;;  %s35_s22 = int_to_ptr.vmem [resolvable:$true] %s34_s22  ;;  %s21_s24 = int_to_ptr.vmem [resolvable:$true] %s20_s24 }
   0x3   :  { %s1468_s25 = scalar_lea.vmem %s35_s22, 2048  ;;  %p1473_p1 = scmp.lt.s32.totalorder %s35_s22, %s35_s22 }
   0x4   :  { %p1469_p0 = scmp.ne.s32.totalorder %s35_s22, %s1468_s25  ;;  %p1474_p2 = scmp.lt.s32.totalorder %s1468_s25, %s1468_s25 }
   0x6   :  { %p1475_p3 = por %p1474_p2, %p1473_p1 }
   0x8   :  { %p1476_p4 = pnand %p1475_p3, %p1469_p0 }
   0xa   :  { %1479 = shalt.err (!%p1476_p4)
}
   0xb   :  { %s1526_s26 = smov 128   ;;  %s1527_s27 = smov 8  }
   0xc   :  { %40 = dma.hbm_to_vmem [thread:$0]  %s1959_s3, 2048, %s35_s22, [#allocation6], %s1526_s26, %s1526_s26, %s1527_s27  }
   0xd   :  { %s1488_s30 = scalar_lea.vmem %s21_s24, 2048  ;;  %p1493_p6 = scmp.lt.s32.totalorder %s21_s24, %s21_s24 }
   0xe   :  { %p1489_p5 = scmp.ne.s32.totalorder %s21_s24, %s1488_s30  ;;  %p1494_p7 = scmp.lt.s32.totalorder %s1488_s30, %s1488_s30 }
  0x10   :  { %p1495_p8 = por %p1494_p7, %p1493_p6 }
  0x12   :  { %p1496_p9 = pnand %p1495_p8, %p1489_p5 }
  0x14   :  { %1499 = shalt.err (!%p1496_p9)
}
  0x15   :  { %26 = dma.hbm_to_vmem [thread:$0]  %s1957_s1, 2048, %s21_s24, [#allocation4], %s1526_s26, %s1526_s26, %s1527_s27  }
  0x16   :  { %s1528_s9 = smov [#allocation7]  }
  0x17   :  { %s46_s10 = sshll.u32 %s1528_s9, 4  ;;  %s47_s10 = int_to_ptr.vmem [resolvable:$true] %s46_s10 }
  0x18   :  { %s1508_s11 = scalar_lea.vmem %s47_s10, 2048  ;;  %p1513_p11 = scmp.lt.s32.totalorder %s47_s10, %s47_s10 }
  0x19   :  { %p1509_p10 = scmp.ne.s32.totalorder %s47_s10, %s1508_s11  ;;  %p1514_p12 = scmp.lt.s32.totalorder %s1508_s11, %s1508_s11 }
  0x1b   :  { %p1515_p13 = por %p1514_p12, %p1513_p11 }
  0x1d   :  { %p1516_p0 = pnand %p1515_p13, %p1509_p10 }
  0x1f   :  { %1519 = shalt.err (!%p1516_p0)
}
  0x20   :  { %52 = dma.hbm_to_vmem [thread:$0]  %s1960_s4, 2048, %s47_s10, [#allocation6], %s1526_s26, %s1526_s26, %s1527_s27  }
  0x21   :  { %1520 = dma.done.wait [#allocation4], 2048  }
  0x22   :  { %1521 = vsyncadd [#allocation4], 4294965248 }
  0x23   :  { %1522 = dma.done.wait [#allocation6], 4096  }
  0x24   :  { %1523 = vsyncadd [#allocation6], 4294963200  ;;  %v1529_v0 = vmov 0.0   ;;  %vm1530_vm0 = vmmov 0   ;;  %v87_v1 = vld [vmem:[#allocation3 + $0x78] sm:$0xff]  ;;  %v86_v2 = vld [vmem:[#allocation3 + $0x70] sm:$0xff] }
  0x25   :  { %1138 = vmatprep.subr.mxu1 %v1529_v0  ;;  %1170 = vmatprep.mubr.msk.f32.mxu1 %vm1530_vm0, %v1529_v0  ;;  %v1578_v3 = vld [vmem:[#allocation5 + $0x78] sm:$0xff]  ;;  %v1581_v4 = vld [vmem:[#allocation5 + $0x70] sm:$0xff]  ;;  %v85_v5 = vld [vmem:[#allocation3 + $0x68] sm:$0xff] }
  0x26   :  { %1094 = vmatprep.subr.mxu0 %v87_v1  ;;  %1139 = vmatpush3.msra.mxu1 %v1578_v3  ;;  %v1584_v6 = vld [vmem:[#allocation5 + $0x68] sm:$0xff]  ;;  %v84_v7 = vld [vmem:[#allocation3 + $0x60] sm:$0xff]  ;;  %v83_v9 = vld [vmem:[#allocation3 + $0x58] sm:$0xff] }
  0x27   :  { %1095 = vmatpush3.msra.mxu0 %v87_v1  ;;  %1140 = vmatprep.subr.mxu1 %v1529_v0  ;;  %v1588_v8 = vld [vmem:[#allocation5 + $0x60] sm:$0xff]  ;;  %v1592_v10 = vld [vmem:[#allocation5 + $0x58] sm:$0xff]  ;;  %v82_v11 = vld [vmem:[#allocation3 + $0x50] sm:$0xff] }
  0x28   :  { %1096 = vmatprep.subr.mxu0 %v86_v2  ;;  %1141 = vmatpush3.msra.mxu1 %v1581_v4  ;;  %v1596_v12 = vld [vmem:[#allocation5 + $0x50] sm:$0xff]  ;;  %v81_v13 = vld [vmem:[#allocation3 + $0x48] sm:$0xff]  ;;  %v80_v15 = vld [vmem:[#allocation3 + $0x40] sm:$0xff] }
  0x29   :  { %1097 = vmatpush3.msra.mxu0 %v86_v2  ;;  %1142 = vmatprep.subr.mxu1 %v1529_v0  ;;  %v1600_v14 = vld [vmem:[#allocation5 + $0x48] sm:$0xff]  ;;  %v1604_v16 = vld [vmem:[#allocation5 + $0x40] sm:$0xff]  ;;  %v79_v17 = vld [vmem:[#allocation3 + $0x38] sm:$0xff] }
  0x2a   :  { %1098 = vmatprep.subr.mxu0 %v85_v5  ;;  %1143 = vmatpush3.msra.mxu1 %v1584_v6  ;;  %v1608_v18 = vld [vmem:[#allocation5 + $0x38] sm:$0xff]  ;;  %v78_v19 = vld [vmem:[#allocation3 + $0x30] sm:$0xff]  ;;  %v77_v21 = vld [vmem:[#allocation3 + $0x28] sm:$0xff] }
  0x2b   :  { %1099 = vmatpush3.msra.mxu0 %v85_v5  ;;  %1144 = vmatprep.subr.mxu1 %v1529_v0  ;;  %v1612_v20 = vld [vmem:[#allocation5 + $0x30] sm:$0xff]  ;;  %v1616_v22 = vld [vmem:[#allocation5 + $0x28] sm:$0xff]  ;;  %v76_v23 = vld [vmem:[#allocation3 + $0x20] sm:$0xff] }
  0x2c   :  { %1100 = vmatprep.subr.mxu0 %v84_v7  ;;  %1145 = vmatpush3.msra.mxu1 %v1588_v8  ;;  %v1620_v24 = vld [vmem:[#allocation5 + $0x20] sm:$0xff]  ;;  %v75_v25 = vld [vmem:[#allocation3 + $0x18] sm:$0xff]  ;;  %v74_v27 = vld [vmem:[#allocation3 + $0x10] sm:$0xff] }
  0x2d   :  { %1101 = vmatpush3.msra.mxu0 %v84_v7  ;;  %1146 = vmatprep.subr.mxu1 %v1529_v0  ;;  %v1624_v26 = vld [vmem:[#allocation5 + $0x18] sm:$0xff]  ;;  %v1628_v28 = vld [vmem:[#allocation5 + $0x10] sm:$0xff]  ;;  %v73_v29 = vld [vmem:[#allocation3 + $0x8] sm:$0xff] }
  0x2e   :  { %1102 = vmatprep.subr.mxu0 %v83_v9  ;;  %1147 = vmatpush3.msra.mxu1 %v1592_v10  ;;  %v64_v30 = vld [vmem:[%s1956_s0] sm:$0xff]  ;;  %v1636_v31 = vld [vmem:[#allocation5 + $0x8] sm:$0xff]  ;;  %v66_v35 = vld [vmem:[%s1956_s0 + $0x10] sm:$0xff] }
  0x2f   :  { %1103 = vmatpush3.msra.mxu0 %v83_v9  ;;  %1148 = vmatprep.subr.mxu1 %v1529_v0  ;;  %v72_v32 = vld [vmem:[#allocation3] sm:$0xff]  ;;  %v65_v34 = vld [vmem:[%s1956_s0 + $0x8] sm:$0xff]  ;;  %v67_v36 = vld [vmem:[%s1956_s0 + $0x18] sm:$0xff] }
  0x30   :  { %1104 = vmatprep.subr.mxu0 %v82_v11  ;;  %1149 = vmatpush3.msra.mxu1 %v1596_v12  ;;  %v1639_v33 = vld [vmem:[#allocation5] sm:$0xff]  ;;  %v69_v38 = vld [vmem:[%s1956_s0 + $0x28] sm:$0xff]  ;;  %v70_v39 = vld [vmem:[%s1956_s0 + $0x30] sm:$0xff] }
  0x31   :  { %1105 = vmatpush3.msra.mxu0 %v82_v11  ;;  %1150 = vmatprep.subr.mxu1 %v1529_v0  ;;  %v68_v37 = vld [vmem:[%s1956_s0 + $0x20] sm:$0xff]  ;;  %v71_v40 = vld [vmem:[%s1956_s0 + $0x38] sm:$0xff] }
  0x32   :  { %1106 = vmatprep.subr.mxu0 %v81_v13  ;;  %1151 = vmatpush3.msra.mxu1 %v1600_v14  ;;  %v1739_v43 = vld [vmem:[%s1958_s2] ss:$0 sm:$0xff] }
  0x33   :  { %1107 = vmatpush3.msra.mxu0 %v81_v13  ;;  %1152 = vmatprep.subr.mxu1 %v1529_v0 }
  0x34   :  { %1108 = vmatprep.subr.mxu0 %v80_v15  ;;  %1153 = vmatpush3.msra.mxu1 %v1604_v16 }
  0x35   :  { %1109 = vmatpush3.msra.mxu0 %v80_v15  ;;  %1154 = vmatprep.subr.mxu1 %v1529_v0 }
  0x36   :  { %1110 = vmatprep.subr.mxu0 %v79_v17  ;;  %1155 = vmatpush3.msra.mxu1 %v1608_v18 }
  0x37   :  { %1111 = vmatpush3.msra.mxu0 %v79_v17  ;;  %1156 = vmatprep.subr.mxu1 %v1529_v0 }
  0x38   :  { %1112 = vmatprep.subr.mxu0 %v78_v19  ;;  %1157 = vmatpush3.msra.mxu1 %v1612_v20 }
  0x39   :  { %1113 = vmatpush3.msra.mxu0 %v78_v19  ;;  %1158 = vmatprep.subr.mxu1 %v1529_v0 }
  0x3a   :  { %1114 = vmatprep.subr.mxu0 %v77_v21  ;;  %1159 = vmatpush3.msra.mxu1 %v1616_v22 }
  0x3b   :  { %1115 = vmatpush3.msra.mxu0 %v77_v21  ;;  %1160 = vmatprep.subr.mxu1 %v1529_v0 }
  0x3c   :  { %1116 = vmatprep.subr.mxu0 %v76_v23  ;;  %1161 = vmatpush3.msra.mxu1 %v1620_v24 }
  0x3d   :  { %1117 = vmatpush3.msra.mxu0 %v76_v23  ;;  %1162 = vmatprep.subr.mxu1 %v1529_v0  ;;  %v824_v23 = vld [vmem:[#allocation7 + $0x48] sm:$0xff] }
  0x3e   :  { %1118 = vmatprep.subr.mxu0 %v75_v25  ;;  %1163 = vmatpush3.msra.mxu1 %v1624_v26 }
  0x3f   :  { %1119 = vmatpush3.msra.mxu0 %v75_v25  ;;  %1164 = vmatprep.subr.mxu1 %v1529_v0  ;;  %v822_v25 = vld [vmem:[#allocation7 + $0x38] sm:$0xff] }
  0x40   :  { %1120 = vmatprep.subr.mxu0 %v74_v27  ;;  %1165 = vmatpush3.msra.mxu1 %v1628_v28 }
  0x41   :  { %1121 = vmatpush3.msra.mxu0 %v74_v27  ;;  %1166 = vmatprep.subr.mxu1 %v1529_v0  ;;  %v820_v27 = vld [vmem:[#allocation7 + $0x28] sm:$0xff] }
  0x42   :  { %1122 = vmatprep.subr.mxu0 %v73_v29  ;;  %1126 = vmatprep.mubr.f32.mxu0 %v64_v30 }
  0x43   :  { %1123 = vmatpush3.msra.mxu0 %v73_v29  ;;  %1167 = vmatpush3.msra.mxu1 %v1636_v31  ;;  %v818_v29 = vld [vmem:[#allocation7 + $0x18] sm:$0xff] }
  0x44   :  { %1124 = vmatprep.subr.mxu0 %v72_v32  ;;  %1168 = vmatprep.subr.mxu1 %v1529_v0 }
  0x45   :  { %1125 = vmatpush3.msra.mxu0 %v72_v32  ;;  %1169 = vmatpush3.msra.mxu1 %v1639_v33 }
  0x46   :  { %1127 = vmatmul.mubr.f32.vlgmr.msra.gmra.mxu0 %v65_v34  ;;  %1171 = vmatmul.mubr.f32.vlgmr.msra.gmra.mxu1 %v1529_v0 }
  0x47   :  { %1173 = vmatprep.subr.mxu0 %v1529_v0  ;;  %1129 = vmatprep.mubr.f32.mxu0 %v66_v35  ;;  %v817_v35 = vld [vmem:[#allocation7 + $0x10] sm:$0xff] }
  0x48   :  { %1174 = vmatpush3.msra.mxu0 %v1578_v3  ;;  %1208 = vmatprep.subr.mxu1 %v1529_v0 }
  0x49   :  { %1175 = vmatprep.subr.mxu0 %v1529_v0  ;;  %1209 = vmatpush3.msra.mxu1 %v1578_v3 }
  0x4a   :  { %1176 = vmatpush3.msra.mxu0 %v1581_v4  ;;  %1210 = vmatprep.subr.mxu1 %v1529_v0 }
  0x4b   :  { %1177 = vmatprep.subr.mxu0 %v1529_v0  ;;  %1130 = vmatmul.mubr.f32.gmra.mxu0 %v67_v36  ;;  %v816_v36 = vld [vmem:[#allocation7 + $0x8] sm:$0xff] }
  0x4c   :  { %1178 = vmatpush3.msra.mxu0 %v1584_v6  ;;  %1132 = vmatprep.mubr.f32.mxu0 %v68_v37  ;;  %v815_v37 = vld [vmem:[#allocation7] sm:$0xff] }
  0x4d   :  { %1179 = vmatprep.subr.mxu0 %v1529_v0  ;;  %1211 = vmatpush3.msra.mxu1 %v1581_v4 }
  0x4e   :  { %1180 = vmatpush3.msra.mxu0 %v1588_v8  ;;  %1212 = vmatprep.subr.mxu1 %v1529_v0 }
  0x4f   :  { %1181 = vmatprep.subr.mxu0 %v1529_v0  ;;  %1133 = vmatmul.mubr.f32.gmra.mxu0 %v69_v38 }
  0x50   :  { %1182 = vmatpush3.msra.mxu0 %v1592_v10  ;;  %1213 = vmatpush3.msra.mxu1 %v1584_v6 }
  0x51   :  { %1183 = vmatprep.subr.mxu0 %v1529_v0  ;;  %1214 = vmatprep.subr.mxu1 %v1529_v0 }
  0x52   :  { %1184 = vmatpush3.msra.mxu0 %v1596_v12  ;;  %1215 = vmatpush3.msra.mxu1 %v1588_v8 }
  0x53   :  { %1185 = vmatprep.subr.mxu0 %v1529_v0  ;;  %1216 = vmatprep.subr.mxu1 %v1529_v0 }
  0x54   :  { %1186 = vmatpush3.msra.mxu0 %v1600_v14  ;;  %1217 = vmatpush3.msra.mxu1 %v1592_v10 }
  0x55   :  { %1187 = vmatprep.subr.mxu0 %v1529_v0  ;;  %1218 = vmatprep.subr.mxu1 %v1529_v0 }
  0x56   :  { %1188 = vmatpush3.msra.mxu0 %v1604_v16  ;;  %1219 = vmatpush3.msra.mxu1 %v1596_v12 }
  0x57   :  { %1189 = vmatprep.subr.mxu0 %v1529_v0  ;;  %1220 = vmatprep.subr.mxu1 %v1529_v0 }
  0x58   :  { %1190 = vmatpush3.msra.mxu0 %v1608_v18  ;;  %1221 = vmatpush3.msra.mxu1 %v1600_v14 }
  0x59   :  { %1191 = vmatprep.subr.mxu0 %v1529_v0  ;;  %1222 = vmatprep.subr.mxu1 %v1529_v0 }
  0x5a   :  { %1192 = vmatpush3.msra.mxu0 %v1612_v20  ;;  %1223 = vmatpush3.msra.mxu1 %v1604_v16 }
  0x5b   :  { %1193 = vmatprep.subr.mxu0 %v1529_v0  ;;  %1224 = vmatprep.subr.mxu1 %v1529_v0 }
  0x5c   :  { %1194 = vmatpush3.msra.mxu0 %v1616_v22  ;;  %1225 = vmatpush3.msra.mxu1 %v1608_v18 }
  0x5d   :  { %1195 = vmatprep.subr.mxu0 %v1529_v0  ;;  %1226 = vmatprep.subr.mxu1 %v1529_v0 }
  0x5e   :  { %1196 = vmatpush3.msra.mxu0 %v1620_v24  ;;  %1227 = vmatpush3.msra.mxu1 %v1612_v20 }
  0x5f   :  { %1197 = vmatprep.subr.mxu0 %v1529_v0  ;;  %1228 = vmatprep.subr.mxu1 %v1529_v0 }
  0x60   :  { %1198 = vmatpush3.msra.mxu0 %v1624_v26  ;;  %1229 = vmatpush3.msra.mxu1 %v1616_v22 }
  0x61   :  { %1199 = vmatprep.subr.mxu0 %v1529_v0  ;;  %1230 = vmatprep.subr.mxu1 %v1529_v0 }
  0x62   :  { %1200 = vmatpush3.msra.mxu0 %v1628_v28  ;;  %1231 = vmatpush3.msra.mxu1 %v1620_v24 }
  0x63   :  { %1201 = vmatprep.subr.mxu0 %v1529_v0  ;;  %1232 = vmatprep.subr.mxu1 %v1529_v0 }
  0x64   :  { %1202 = vmatpush3.msra.mxu0 %v1636_v31  ;;  %1233 = vmatpush3.msra.mxu1 %v1624_v26 }
  0x65   :  { %1203 = vmatprep.subr.mxu0 %v1529_v0  ;;  %1234 = vmatprep.subr.mxu1 %v1529_v0 }
  0x66   :  { %1204 = vmatpush3.msra.mxu0 %v1639_v33  ;;  %1235 = vmatpush3.msra.mxu1 %v1628_v28 }
  0x67   :  { %1236 = vmatprep.subr.mxu1 %v1529_v0  ;;  %1240 = vmatprep.mubr.msk.f32.mxu1 %vm1530_vm0, %v1529_v0 }
  0x68   :  { %1237 = vmatpush3.msra.mxu1 %v1636_v31  ;;  %1243 = vmatprep.subr.mxu0 %v1529_v0 }
  0x69   :  { %1238 = vmatprep.subr.mxu1 %v1529_v0  ;;  %1135 = vmatprep.mubr.f32.mxu0 %v70_v39 }
  0x6a   :  { %1239 = vmatpush3.msra.mxu1 %v1639_v33  ;;  %1136 = vmatmul.mubr.f32.gmra.mxu0 %v71_v40 }
  0x6b   :  { %1278 = vmatprep.subr.mxu1 %v1529_v0  ;;  %1205 = vmatprep.mubr.msk.f32.mxu0 %vm1530_vm0, %v1529_v0 }
 0x106   :  { %v1128_v41 = vpop.f32.mrf.mxu0  ;;  %v291_v42 = vpop.f32.mrf.mxu1 }
 0x107   :  { %v167_v55 = vadd.f32 %v1128_v41, %v1739_v43 }
 0x108   :  { %v161_v44 = vpop.f32.mrf.mxu0  ;;  %v1172_v45 = vpop.f32.mrf.mxu1 }
 0x109   :  { %v162_v46 = vadd.f32 %v1739_v43, %v161_v44  ;;  %v916_v44 = vld [vmem:[%s1961_s5] ss:$0 sm:$0xff] }
 0x10b   :  { %v295_v47 = vadd.f32 %v291_v42, %v162_v46  ;;  %v1776_v49 = vpop.f32.mrf.mxu0 }
 0x10c   :  { %v177_v2 = vadd.f32 %v1776_v49, %v1739_v43 }
 0x10d   :  { %v296_v48 = vmax.f32 %v295_v47, 0.0  ;;  %v171_v50 = vpop.f32.mrf.mxu0 }
 0x10e   :  { %v172_v60 = vadd.f32 %v1739_v43, %v171_v50 }
 0x10f   :  { %1206 = vmatmul.mubr.f32.vlgmr.msra.gmra.mxu0 %v296_v48  ;;  %v1778_v51 = vpop.f32.mrf.mxu0 }
 0x110   :  { %1244 = vmatpush3.msra.mxu0 %v1578_v3  ;;  %1275 = vmatprep.mubr.msk.f32.mxu0 %vm1530_vm0, %v1529_v0 }
 0x111   :  { %1245 = vmatprep.subr.mxu0 %v1529_v0  ;;  %v1780_v52 = vpop.f32.mrf.mxu0 }
 0x112   :  { %1246 = vmatpush3.msra.mxu0 %v1581_v4  ;;  %v182_v13 = vadd.f32 %v1739_v43, %v1780_v52 }
 0x113   :  { %1247 = vmatprep.subr.mxu0 %v1529_v0 }
 0x114   :  { %1248 = vmatpush3.msra.mxu0 %v1584_v6 }
 0x115   :  { %1249 = vmatprep.subr.mxu0 %v1529_v0 }
 0x116   :  { %1250 = vmatpush3.msra.mxu0 %v1588_v8 }
 0x117   :  { %1251 = vmatprep.subr.mxu0 %v1529_v0 }
 0x118   :  { %1252 = vmatpush3.msra.mxu0 %v1592_v10 }
 0x119   :  { %1253 = vmatprep.subr.mxu0 %v1529_v0 }
 0x11a   :  { %1254 = vmatpush3.msra.mxu0 %v1596_v12 }
 0x11b   :  { %1255 = vmatprep.subr.mxu0 %v1529_v0 }
 0x11c   :  { %1256 = vmatpush3.msra.mxu0 %v1600_v14 }
 0x11d   :  { %1257 = vmatprep.subr.mxu0 %v1529_v0 }
 0x11e   :  { %1258 = vmatpush3.msra.mxu0 %v1604_v16 }
 0x11f   :  { %1259 = vmatprep.subr.mxu0 %v1529_v0 }
 0x120   :  { %1260 = vmatpush3.msra.mxu0 %v1608_v18 }
 0x121   :  { %1261 = vmatprep.subr.mxu0 %v1529_v0 }
 0x122   :  { %1262 = vmatpush3.msra.mxu0 %v1612_v20 }
 0x123   :  { %1263 = vmatprep.subr.mxu0 %v1529_v0 }
 0x124   :  { %1264 = vmatpush3.msra.mxu0 %v1616_v22 }
 0x125   :  { %1265 = vmatprep.subr.mxu0 %v1529_v0 }
 0x126   :  { %1266 = vmatpush3.msra.mxu0 %v1620_v24 }
 0x127   :  { %1267 = vmatprep.subr.mxu0 %v1529_v0 }
 0x128   :  { %1268 = vmatpush3.msra.mxu0 %v1624_v26 }
 0x129   :  { %1269 = vmatprep.subr.mxu0 %v1529_v0 }
 0x12a   :  { %1270 = vmatpush3.msra.mxu0 %v1628_v28  ;;  %v1782_v53 = vpop.f32.mrf.mxu0 }
 0x12b   :  { %1271 = vmatprep.subr.mxu0 %v1529_v0  ;;  %v197_v38 = vadd.f32 %v1782_v53, %v1739_v43 }
 0x12c   :  { %1272 = vmatpush3.msra.mxu0 %v1636_v31  ;;  %v1784_v54 = vpop.f32.mrf.mxu0 }
 0x12d   :  { %1273 = vmatprep.subr.mxu0 %v1529_v0  ;;  %v192_v30 = vadd.f32 %v1739_v43, %v1784_v54 }
 0x12e   :  { %1274 = vmatpush3.msra.mxu0 %v1639_v33 }
 0x12f   :  { %1313 = vmatprep.subr.mxu0 %v1529_v0 }
 0x1cf   :  { %v365_v56 = vpop.f32.mrf.mxu0 }
 0x1d0   :  { %v369_v57 = vadd.f32 %v365_v56, %v167_v55 }
 0x1d1   :  { %v1207_v58 = vpop.f32.mrf.mxu0 }
 0x1d2   :  { %v370_v59 = vmax.f32 %v369_v57, 0.0 }
 0x1d4   :  { %1241 = vmatmul.mubr.f32.vlgmr.msra.gmra.mxu1 %v370_v59 }
 0x1d5   :  { %1279 = vmatpush3.msra.mxu1 %v1578_v3  ;;  %1310 = vmatprep.mubr.msk.f32.mxu1 %vm1530_vm0, %v1529_v0 }
 0x1d6   :  { %1280 = vmatprep.subr.mxu1 %v1529_v0 }
 0x1d7   :  { %1281 = vmatpush3.msra.mxu1 %v1581_v4 }
 0x1d8   :  { %1282 = vmatprep.subr.mxu1 %v1529_v0 }
 0x1d9   :  { %1283 = vmatpush3.msra.mxu1 %v1584_v6 }
 0x1da   :  { %1284 = vmatprep.subr.mxu1 %v1529_v0 }
 0x1db   :  { %1285 = vmatpush3.msra.mxu1 %v1588_v8 }
 0x1dc   :  { %1286 = vmatprep.subr.mxu1 %v1529_v0 }
 0x1dd   :  { %1287 = vmatpush3.msra.mxu1 %v1592_v10 }
 0x1de   :  { %1288 = vmatprep.subr.mxu1 %v1529_v0 }
 0x1df   :  { %1289 = vmatpush3.msra.mxu1 %v1596_v12 }
 0x1e0   :  { %1290 = vmatprep.subr.mxu1 %v1529_v0 }
 0x1e1   :  { %1291 = vmatpush3.msra.mxu1 %v1600_v14 }
 0x1e2   :  { %1292 = vmatprep.subr.mxu1 %v1529_v0 }
 0x1e3   :  { %1293 = vmatpush3.msra.mxu1 %v1604_v16 }
 0x1e4   :  { %1294 = vmatprep.subr.mxu1 %v1529_v0 }
 0x1e5   :  { %1295 = vmatpush3.msra.mxu1 %v1608_v18 }
 0x1e6   :  { %1296 = vmatprep.subr.mxu1 %v1529_v0 }
 0x1e7   :  { %1297 = vmatpush3.msra.mxu1 %v1612_v20 }
 0x1e8   :  { %1298 = vmatprep.subr.mxu1 %v1529_v0 }
 0x1e9   :  { %1299 = vmatpush3.msra.mxu1 %v1616_v22 }
 0x1ea   :  { %1300 = vmatprep.subr.mxu1 %v1529_v0 }
 0x1eb   :  { %1301 = vmatpush3.msra.mxu1 %v1620_v24 }
 0x1ec   :  { %1302 = vmatprep.subr.mxu1 %v1529_v0 }
 0x1ed   :  { %1303 = vmatpush3.msra.mxu1 %v1624_v26 }
 0x1ee   :  { %1304 = vmatprep.subr.mxu1 %v1529_v0 }
 0x1ef   :  { %1305 = vmatpush3.msra.mxu1 %v1628_v28 }
 0x1f0   :  { %1306 = vmatprep.subr.mxu1 %v1529_v0 }
 0x1f1   :  { %1307 = vmatpush3.msra.mxu1 %v1636_v31 }
 0x1f2   :  { %1308 = vmatprep.subr.mxu1 %v1529_v0 }
 0x1f3   :  { %1309 = vmatpush3.msra.mxu1 %v1639_v33 }
 0x1f4   :  { %1348 = vmatprep.subr.mxu1 %v1529_v0 }
 0x294   :  { %v439_v61 = vpop.f32.mrf.mxu1 }
 0x295   :  { %v443_v62 = vadd.f32 %v439_v61, %v172_v60 }
 0x296   :  { %v1242_v63 = vpop.f32.mrf.mxu1 }
 0x297   :  { %v444_v1 = vmax.f32 %v443_v62, 0.0 }
 0x299   :  { %1276 = vmatmul.mubr.f32.vlgmr.msra.gmra.mxu0 %v444_v1 }
 0x29a   :  { %1314 = vmatpush3.msra.mxu0 %v1578_v3  ;;  %1345 = vmatprep.mubr.msk.f32.mxu0 %vm1530_vm0, %v1529_v0 }
 0x29b   :  { %1315 = vmatprep.subr.mxu0 %v1529_v0 }
 0x29c   :  { %1316 = vmatpush3.msra.mxu0 %v1581_v4 }
 0x29d   :  { %1317 = vmatprep.subr.mxu0 %v1529_v0 }
 0x29e   :  { %1318 = vmatpush3.msra.mxu0 %v1584_v6 }
 0x29f   :  { %1319 = vmatprep.subr.mxu0 %v1529_v0 }
 0x2a0   :  { %1320 = vmatpush3.msra.mxu0 %v1588_v8 }
 0x2a1   :  { %1321 = vmatprep.subr.mxu0 %v1529_v0 }
 0x2a2   :  { %1322 = vmatpush3.msra.mxu0 %v1592_v10 }
 0x2a3   :  { %1323 = vmatprep.subr.mxu0 %v1529_v0 }
 0x2a4   :  { %1324 = vmatpush3.msra.mxu0 %v1596_v12 }
 0x2a5   :  { %1325 = vmatprep.subr.mxu0 %v1529_v0 }
 0x2a6   :  { %1326 = vmatpush3.msra.mxu0 %v1600_v14 }
 0x2a7   :  { %1327 = vmatprep.subr.mxu0 %v1529_v0 }
 0x2a8   :  { %1328 = vmatpush3.msra.mxu0 %v1604_v16 }
 0x2a9   :  { %1329 = vmatprep.subr.mxu0 %v1529_v0 }
 0x2aa   :  { %1330 = vmatpush3.msra.mxu0 %v1608_v18 }
 0x2ab   :  { %1331 = vmatprep.subr.mxu0 %v1529_v0 }
 0x2ac   :  { %1332 = vmatpush3.msra.mxu0 %v1612_v20 }
 0x2ad   :  { %1333 = vmatprep.subr.mxu0 %v1529_v0 }
 0x2ae   :  { %1334 = vmatpush3.msra.mxu0 %v1616_v22 }
 0x2af   :  { %1335 = vmatprep.subr.mxu0 %v1529_v0 }
 0x2b0   :  { %1336 = vmatpush3.msra.mxu0 %v1620_v24 }
 0x2b1   :  { %1337 = vmatprep.subr.mxu0 %v1529_v0 }
 0x2b2   :  { %1338 = vmatpush3.msra.mxu0 %v1624_v26 }
 0x2b3   :  { %1339 = vmatprep.subr.mxu0 %v1529_v0 }
 0x2b4   :  { %1340 = vmatpush3.msra.mxu0 %v1628_v28 }
 0x2b5   :  { %1341 = vmatprep.subr.mxu0 %v1529_v0 }
 0x2b6   :  { %1342 = vmatpush3.msra.mxu0 %v1636_v31 }
 0x2b7   :  { %1343 = vmatprep.subr.mxu0 %v1529_v0 }
 0x2b8   :  { %1344 = vmatpush3.msra.mxu0 %v1639_v33 }
 0x2b9   :  { %1383 = vmatprep.subr.mxu0 %v1529_v0 }
 0x359   :  { %v513_v5 = vpop.f32.mrf.mxu0 }
 0x35a   :  { %v517_v7 = vadd.f32 %v513_v5, %v177_v2 }
 0x35b   :  { %v1277_v9 = vpop.f32.mrf.mxu0 }
 0x35c   :  { %v518_v11 = vmax.f32 %v517_v7, 0.0 }
 0x35e   :  { %1311 = vmatmul.mubr.f32.vlgmr.msra.gmra.mxu1 %v518_v11 }
 0x35f   :  { %1349 = vmatpush3.msra.mxu1 %v1578_v3  ;;  %1380 = vmatprep.mubr.msk.f32.mxu1 %vm1530_vm0, %v1529_v0 }
 0x360   :  { %1350 = vmatprep.subr.mxu1 %v1529_v0 }
 0x361   :  { %1351 = vmatpush3.msra.mxu1 %v1581_v4 }
 0x362   :  { %1352 = vmatprep.subr.mxu1 %v1529_v0 }
 0x363   :  { %1353 = vmatpush3.msra.mxu1 %v1584_v6 }
 0x364   :  { %1354 = vmatprep.subr.mxu1 %v1529_v0 }
 0x365   :  { %1355 = vmatpush3.msra.mxu1 %v1588_v8 }
 0x366   :  { %1356 = vmatprep.subr.mxu1 %v1529_v0 }
 0x367   :  { %1357 = vmatpush3.msra.mxu1 %v1592_v10 }
 0x368   :  { %1358 = vmatprep.subr.mxu1 %v1529_v0 }
 0x369   :  { %1359 = vmatpush3.msra.mxu1 %v1596_v12 }
 0x36a   :  { %1360 = vmatprep.subr.mxu1 %v1529_v0 }
 0x36b   :  { %1361 = vmatpush3.msra.mxu1 %v1600_v14 }
 0x36c   :  { %1362 = vmatprep.subr.mxu1 %v1529_v0 }
 0x36d   :  { %1363 = vmatpush3.msra.mxu1 %v1604_v16 }
 0x36e   :  { %1364 = vmatprep.subr.mxu1 %v1529_v0 }
 0x36f   :  { %1365 = vmatpush3.msra.mxu1 %v1608_v18 }
 0x370   :  { %1366 = vmatprep.subr.mxu1 %v1529_v0 }
 0x371   :  { %1367 = vmatpush3.msra.mxu1 %v1612_v20 }
 0x372   :  { %1368 = vmatprep.subr.mxu1 %v1529_v0 }
 0x373   :  { %1369 = vmatpush3.msra.mxu1 %v1616_v22 }
 0x374   :  { %1370 = vmatprep.subr.mxu1 %v1529_v0 }
 0x375   :  { %1371 = vmatpush3.msra.mxu1 %v1620_v24 }
 0x376   :  { %1372 = vmatprep.subr.mxu1 %v1529_v0 }
 0x377   :  { %1373 = vmatpush3.msra.mxu1 %v1624_v26 }
 0x378   :  { %1374 = vmatprep.subr.mxu1 %v1529_v0 }
 0x379   :  { %1375 = vmatpush3.msra.mxu1 %v1628_v28 }
 0x37a   :  { %1376 = vmatprep.subr.mxu1 %v1529_v0 }
 0x37b   :  { %1377 = vmatpush3.msra.mxu1 %v1636_v31 }
 0x37c   :  { %1378 = vmatprep.subr.mxu1 %v1529_v0 }
 0x37d   :  { %1379 = vmatpush3.msra.mxu1 %v1639_v33 }
 0x37e   :  { %1418 = vmatprep.subr.mxu1 %v1529_v0 }
 0x41e   :  { %v587_v15 = vpop.f32.mrf.mxu1 }
 0x41f   :  { %v591_v17 = vadd.f32 %v587_v15, %v182_v13 }
 0x420   :  { %v1312_v19 = vpop.f32.mrf.mxu1 }
 0x421   :  { %v592_v21 = vmax.f32 %v591_v17, 0.0 }
 0x423   :  { %1346 = vmatmul.mubr.f32.vlgmr.msra.gmra.mxu0 %v592_v21 }
 0x424   :  { %1384 = vmatpush3.msra.mxu0 %v1578_v3  ;;  %1415 = vmatprep.mubr.msk.f32.mxu0 %vm1530_vm0, %v1529_v0  ;;  %v187_v3 = vadd.f32 %v1778_v51, %v1739_v43 }
 0x425   :  { %1385 = vmatprep.subr.mxu0 %v1529_v0 }
 0x426   :  { %1386 = vmatpush3.msra.mxu0 %v1581_v4 }
 0x427   :  { %1387 = vmatprep.subr.mxu0 %v1529_v0 }
 0x428   :  { %1388 = vmatpush3.msra.mxu0 %v1584_v6 }
 0x429   :  { %1389 = vmatprep.subr.mxu0 %v1529_v0 }
 0x42a   :  { %1390 = vmatpush3.msra.mxu0 %v1588_v8 }
 0x42b   :  { %1391 = vmatprep.subr.mxu0 %v1529_v0 }
 0x42c   :  { %1392 = vmatpush3.msra.mxu0 %v1592_v10 }
 0x42d   :  { %1393 = vmatprep.subr.mxu0 %v1529_v0 }
 0x42e   :  { %1394 = vmatpush3.msra.mxu0 %v1596_v12  ;;  %v830_v12 = vld [vmem:[#allocation7 + $0x78] sm:$0xff] }
 0x42f   :  { %1395 = vmatprep.subr.mxu0 %v1529_v0 }
 0x430   :  { %1396 = vmatpush3.msra.mxu0 %v1600_v14  ;;  %v829_v14 = vld [vmem:[#allocation7 + $0x70] sm:$0xff] }
 0x431   :  { %1397 = vmatprep.subr.mxu0 %v1529_v0 }
 0x432   :  { %1398 = vmatpush3.msra.mxu0 %v1604_v16  ;;  %v828_v16 = vld [vmem:[#allocation7 + $0x68] sm:$0xff] }
 0x433   :  { %1399 = vmatprep.subr.mxu0 %v1529_v0 }
 0x434   :  { %1400 = vmatpush3.msra.mxu0 %v1608_v18  ;;  %v827_v18 = vld [vmem:[#allocation7 + $0x60] sm:$0xff] }
 0x435   :  { %1401 = vmatprep.subr.mxu0 %v1529_v0 }
 0x436   :  { %1402 = vmatpush3.msra.mxu0 %v1612_v20  ;;  %v826_v20 = vld [vmem:[#allocation7 + $0x58] sm:$0xff] }
 0x437   :  { %1403 = vmatprep.subr.mxu0 %v1529_v0 }
 0x438   :  { %1404 = vmatpush3.msra.mxu0 %v1616_v22  ;;  %v825_v22 = vld [vmem:[#allocation7 + $0x50] sm:$0xff] }
 0x439   :  { %1405 = vmatprep.subr.mxu0 %v1529_v0 }
 0x43a   :  { %1406 = vmatpush3.msra.mxu0 %v1620_v24  ;;  %v823_v24 = vld [vmem:[#allocation7 + $0x40] sm:$0xff] }
 0x43b   :  { %1407 = vmatprep.subr.mxu0 %v1529_v0 }
 0x43c   :  { %1408 = vmatpush3.msra.mxu0 %v1624_v26  ;;  %v821_v26 = vld [vmem:[#allocation7 + $0x30] sm:$0xff] }
 0x43d   :  { %1409 = vmatprep.subr.mxu0 %v1529_v0 }
 0x43e   :  { %1410 = vmatpush3.msra.mxu0 %v1628_v28  ;;  %v819_v28 = vld [vmem:[#allocation7 + $0x20] sm:$0xff] }
 0x43f   :  { %1411 = vmatprep.subr.mxu0 %v1529_v0 }
 0x440   :  { %1412 = vmatpush3.msra.mxu0 %v1636_v31 }
 0x441   :  { %1413 = vmatprep.subr.mxu0 %v1529_v0 }
 0x442   :  { %1414 = vmatpush3.msra.mxu0 %v1639_v33 }
 0x4e3   :  { %v661_v4 = vpop.f32.mrf.mxu0 }
 0x4e4   :  { %v665_v6 = vadd.f32 %v661_v4, %v187_v3 }
 0x4e5   :  { %v1347_v8 = vpop.f32.mrf.mxu0 }
 0x4e6   :  { %v666_v10 = vmax.f32 %v665_v6, 0.0 }
 0x4e8   :  { %1381 = vmatmul.mubr.f32.vlgmr.msra.gmra.mxu1 %v666_v10 }
 0x4e9   :  { %1450 = vmatprep.mubr.msk.f32.mxu1 %vm1530_vm0, %v1529_v0  ;;  %1419 = vmatpush3.msra.mxu1 %v830_v12 }
 0x4ea   :  { %1420 = vmatprep.subr.mxu1 %v1529_v0 }
 0x4eb   :  { %1421 = vmatpush3.msra.mxu1 %v829_v14 }
 0x4ec   :  { %1422 = vmatprep.subr.mxu1 %v1529_v0 }
 0x4ed   :  { %1423 = vmatpush3.msra.mxu1 %v828_v16 }
 0x4ee   :  { %1424 = vmatprep.subr.mxu1 %v1529_v0 }
 0x4ef   :  { %1425 = vmatpush3.msra.mxu1 %v827_v18 }
 0x4f0   :  { %1426 = vmatprep.subr.mxu1 %v1529_v0 }
 0x4f1   :  { %1427 = vmatpush3.msra.mxu1 %v826_v20 }
 0x4f2   :  { %1428 = vmatprep.subr.mxu1 %v1529_v0 }
 0x4f3   :  { %1429 = vmatpush3.msra.mxu1 %v825_v22 }
 0x4f4   :  { %1430 = vmatprep.subr.mxu1 %v1529_v0 }
 0x4f5   :  { %1431 = vmatpush3.msra.mxu1 %v824_v23 }
 0x4f6   :  { %1432 = vmatprep.subr.mxu1 %v1529_v0 }
 0x4f7   :  { %1433 = vmatpush3.msra.mxu1 %v823_v24 }
 0x4f8   :  { %1434 = vmatprep.subr.mxu1 %v1529_v0 }
 0x4f9   :  { %1435 = vmatpush3.msra.mxu1 %v822_v25 }
 0x4fa   :  { %1436 = vmatprep.subr.mxu1 %v1529_v0 }
 0x4fb   :  { %1437 = vmatpush3.msra.mxu1 %v821_v26 }
 0x4fc   :  { %1438 = vmatprep.subr.mxu1 %v1529_v0 }
 0x4fd   :  { %1439 = vmatpush3.msra.mxu1 %v820_v27 }
 0x4fe   :  { %1440 = vmatprep.subr.mxu1 %v1529_v0 }
 0x4ff   :  { %1441 = vmatpush3.msra.mxu1 %v819_v28 }
 0x500   :  { %1442 = vmatprep.subr.mxu1 %v1529_v0 }
 0x501   :  { %1443 = vmatpush3.msra.mxu1 %v818_v29 }
 0x502   :  { %1444 = vmatprep.subr.mxu1 %v1529_v0 }
 0x503   :  { %1445 = vmatpush3.msra.mxu1 %v817_v35 }
 0x504   :  { %1446 = vmatprep.subr.mxu1 %v1529_v0 }
 0x505   :  { %1447 = vmatpush3.msra.mxu1 %v816_v36 }
 0x506   :  { %1448 = vmatprep.subr.mxu1 %v1529_v0 }
 0x507   :  { %1449 = vmatpush3.msra.mxu1 %v815_v37 }
 0x5a8   :  { %v735_v31 = vpop.f32.mrf.mxu1 }
 0x5a9   :  { %v739_v32 = vadd.f32 %v735_v31, %v192_v30 }
 0x5aa   :  { %v1382_v33 = vpop.f32.mrf.mxu1 }
 0x5ab   :  { %v740_v34 = vmax.f32 %v739_v32, 0.0 }
 0x5ad   :  { %1416 = vmatmul.mubr.f32.vlgmr.msra.gmra.mxu0 %v740_v34 }
 0x66d   :  { %v809_v39 = vpop.f32.mrf.mxu0 }
 0x66e   :  { %v813_v40 = vadd.f32 %v809_v39, %v197_v38 }
 0x66f   :  { %v1417_v41 = vpop.f32.mrf.mxu0 }
 0x670   :  { %v814_v42 = vmax.f32 %v813_v40, 0.0 }
 0x672   :  { %1451 = vmatmul.mubr.f32.vlgmr.msra.gmra.mxu1 %v814_v42 }
 0x732   :  { %v904_v45 = vpop.f32.mrf.mxu1 }
 0x733   :  { %v905_v46 = vadd.f32 %v916_v44, %v904_v45 }
 0x734   :  { %v1452_v47 = vpop.f32.mrf.mxu1 }
 0x735   :  { %908 = vst [vmem:[%s1962_s6] sm:$0xff] %v905_v46 }
 0x736   :  { %913 = vsyncpa [#allocation4], 1 }
 0x737   :  { %914 = vsyncpa [#allocation6], 1 }

</bundles_post_ra>
